<compile_context>
chip_gen: v7x
topology: tpu7x:2x2x1
jax: 0.10.0
libtpu: 0.0.40
codegen_flags: <defaults>
</compile_context>

<pallas_src>
import functools
import math

import jax
import jax.numpy as jnp
from jax.experimental import pallas as pl
from jax.experimental.pallas import tpu as pltpu


def _actor_inverse_kernel(x_ref,
                          w1_ref, b1_ref,
                          w2_ref, b2_ref,
                          w3_ref, b3_ref,
                          w4_ref, b4_ref,
                          out_ref,
                          *, max_action):
    """Fused MLP hot path: bf16 MXU matmuls, f32 accumulation, relu/tanh."""
    x = x_ref[...].astype(jnp.bfloat16)

    h = jnp.dot(x, w1_ref[...], preferred_element_type=jnp.float32) + b1_ref[...]
    h = jnp.maximum(h, 0.0).astype(jnp.bfloat16)

    h = jnp.dot(h, w2_ref[...], preferred_element_type=jnp.float32) + b2_ref[...]
    h = jnp.maximum(h, 0.0).astype(jnp.bfloat16)

    h = jnp.dot(h, w3_ref[...], preferred_element_type=jnp.float32) + b3_ref[...]
    h = jnp.maximum(h, 0.0).astype(jnp.bfloat16)

    a = jnp.dot(h, w4_ref[...], preferred_element_type=jnp.float32) + b4_ref[...]
    out_ref[...] = (max_action * jnp.tanh(a)).astype(out_ref.dtype)


def _pad_cols(a, target_cols):
    pad = target_cols - a.shape[-1]
    if pad > 0:
        a = jnp.pad(a, ((0, 0), (0, pad)))
    return a


def actor_inverse_forward(x, params, max_action, *, tb=None):
    """x: [B, 3*goal] float32.  Returns [B, action] float32."""
    (w1, b1), (w2, b2), (w3, b3), (w4, b4) = params
    B, F = x.shape
    H = w1.shape[1]
    A = w4.shape[1]

    # Lane-dense output: pad action columns up to a multiple of 128 with
    # zero weights/biases (extra columns compute tanh(0)=0, sliced off below).
    AP = max(128, pl.cdiv(A, 128) * 128)
    w4p = _pad_cols(w4, AP)
    b4p = _pad_cols(b4, AP)

    # Batch tile: big enough to feed the MXU / amortize grid-step overhead,
    # small enough to fit the scoped VMEM on every generation. If the whole
    # batch fits in one tile, use it directly (no padding, no extra HBM pass).
    if tb is None:
        tb = B if B <= 512 else 512
    Bp = pl.cdiv(B, tb) * tb
    if Bp != B:
        x = jnp.pad(x, ((0, Bp - B), (0, 0)))

    grid = (Bp // tb,)

    def full(shape):
        # Full-array block, constant index -> resident in VMEM, never re-DMA'd.
        return pl.BlockSpec(shape, lambda i: tuple(0 for _ in shape))

    kernel = functools.partial(_actor_inverse_kernel, max_action=float(max_action))

    flops = 2 * Bp * (F * H + H * H + H * H + H * AP)
    bytes_accessed = (
        x.size * x.dtype.itemsize
        + sum(int(a.size) * a.dtype.itemsize
              for a in (w1, b1, w2, b2, w3, b3, w4p, b4p))
        + Bp * AP * 4
    )
    cost = pl.CostEstimate(flops=int(flops),
                           transcendentals=int(Bp * AP),
                           bytes_accessed=int(bytes_accessed))

    out = pl.pallas_call(
        kernel,
        out_shape=jax.ShapeDtypeStruct((Bp, AP), jnp.float32),
        grid_spec=pltpu.PrefetchScalarGridSpec(
            num_scalar_prefetch=0,
            grid=grid,
            in_specs=[
                pl.BlockSpec((tb, F), lambda i: (i, 0)),   # x tile
                full(w1.shape), full(b1.shape),
                full(w2.shape), full(b2.shape),
                full(w3.shape), full(b3.shape),
                full(w4p.shape), full(b4p.shape),
            ],
            out_specs=pl.BlockSpec((tb, AP), lambda i: (i, 0)),
        ),
        compiler_params=pltpu.CompilerParams(
            dimension_semantics=("parallel",)),
        cost_estimate=cost,
    )(x, w1, b1, w2, b2, w3, b3, w4p, b4p)

    return out[:B, :A]


def xavier_uniform(key, fan_in, fan_out, gain=1.0):
    # Matches torch.nn.init.xavier_uniform_ (gain=1), stored as [in, out].
    limit = gain * math.sqrt(6.0 / (fan_in + fan_out))
    return jax.random.uniform(key, (fan_in, fan_out), jnp.float32,
                              minval=-limit, maxval=limit)


def init_params(key, in_dim, hidden, action_dim):
    k1, k2, k3, k4 = jax.random.split(key, 4)
    def layer(k, fi, fo):
        w = xavier_uniform(k, fi, fo).astype(jnp.bfloat16)   # bf16 MXU inputs
        b = jnp.zeros((1, fo), jnp.float32)                  # f32 bias (added to f32 acc)
        return (w, b)
    return (layer(k1, in_dim, hidden),
            layer(k2, hidden, hidden),
            layer(k3, hidden, hidden),
            layer(k4, hidden, action_dim))


def reference_forward(x, params, max_action):
    # Same numerics as the kernel: bf16 matmul inputs, f32 accumulation.
    (w1, b1), (w2, b2), (w3, b3), (w4, b4) = params
    def lin(h, w, b):
        return jnp.dot(h.astype(jnp.bfloat16), w,
                       preferred_element_type=jnp.float32) + b
    h = jax.nn.relu(lin(x, w1, b1))
    h = jax.nn.relu(lin(h, w2, b2))
    h = jax.nn.relu(lin(h, w3, b3))
    return max_action * jnp.tanh(lin(h, w4, b4))


if __name__ == "__main__":
    # env_params: goal=3 -> input dim 9; action=4; action_max=1.0
    env_params = {"goal": 3, "action": 4, "action_max": 1.0}
    in_dim = 3 * env_params["goal"]
    hidden = 256
    action_dim = env_params["action"]
    max_action = env_params["action_max"]

    key = jax.random.PRNGKey(0)
    kx, kp, kx2 = jax.random.split(key, 3)
    params = init_params(kp, in_dim, hidden, action_dim)

    # Small case (single full-batch block, no padding).
    batch = 2
    x = jax.random.normal(kx, (batch, in_dim), jnp.float32)
    out = jax.block_until_ready(actor_inverse_forward(x, params, max_action))
    ref = reference_forward(x, params, max_action)
    assert out.shape == (batch, action_dim)
    assert jnp.allclose(out, ref, atol=2e-3, rtol=2e-3), "mismatch vs reference (small)"

    # Larger ragged case: exercises multi-step batch grid + padding + slicing.
    batch2 = 600
    x2 = jax.random.normal(kx2, (batch2, in_dim), jnp.float32)
    out2 = jax.block_until_ready(actor_inverse_forward(x2, params, max_action))
    ref2 = reference_forward(x2, params, max_action)
    assert out2.shape == (batch2, action_dim)
    assert jnp.allclose(out2, ref2, atol=2e-3, rtol=2e-3), "mismatch vs reference (tiled)"

    print("KERNEL_OK")
</pallas_src>

<mosaic_0001>
module attributes {stable_mosaic.version = 11 : i64} {
  func.func @_actor_inverse_kernel(%arg0: i32, %arg1: memref<2x9xf32, #tpu.memory_space<vmem>>, %arg2: memref<9x256xbf16, #tpu.memory_space<vmem>>, %arg3: memref<1x256xf32, #tpu.memory_space<vmem>>, %arg4: memref<256x256xbf16, #tpu.memory_space<vmem>>, %arg5: memref<1x256xf32, #tpu.memory_space<vmem>>, %arg6: memref<256x256xbf16, #tpu.memory_space<vmem>>, %arg7: memref<1x256xf32, #tpu.memory_space<vmem>>, %arg8: memref<256x128xbf16, #tpu.memory_space<vmem>>, %arg9: memref<1x128xf32, #tpu.memory_space<vmem>>, %arg10: memref<2x128xf32, #tpu.memory_space<vmem>>) attributes {dimension_semantics = [#tpu.dimension_semantics<parallel>], iteration_bounds = array<i64: 1>, scalar_prefetch = 0 : i64, scratch_operands = 0 : i64, tpu.core_type = #tpu.core_type<tc>, window_params = [{transform_indices = @transform_0, window_bounds = array<i64: 2, 9>}, {pipeline_mode = #tpu.pipeline_mode<synchronous>, transform_indices = @transform_1, window_bounds = array<i64: 9, 256>}, {pipeline_mode = #tpu.pipeline_mode<synchronous>, transform_indices = @transform_2, window_bounds = array<i64: 1, 256>}, {pipeline_mode = #tpu.pipeline_mode<synchronous>, transform_indices = @transform_3, window_bounds = array<i64: 256, 256>}, {pipeline_mode = #tpu.pipeline_mode<synchronous>, transform_indices = @transform_4, window_bounds = array<i64: 1, 256>}, {pipeline_mode = #tpu.pipeline_mode<synchronous>, transform_indices = @transform_5, window_bounds = array<i64: 256, 256>}, {pipeline_mode = #tpu.pipeline_mode<synchronous>, transform_indices = @transform_6, window_bounds = array<i64: 1, 256>}, {pipeline_mode = #tpu.pipeline_mode<synchronous>, transform_indices = @transform_7, window_bounds = array<i64: 256, 128>}, {pipeline_mode = #tpu.pipeline_mode<synchronous>, transform_indices = @transform_8, window_bounds = array<i64: 1, 128>}, {transform_indices = @transform_9, window_bounds = array<i64: 2, 128>}]} {
    %c0 = arith.constant 0 : index
    %c0_0 = arith.constant 0 : index
    %0 = vector.load %arg1[%c0, %c0_0] : memref<2x9xf32, #tpu.memory_space<vmem>>, vector<2x9xf32>
    %1 = arith.truncf %0 : vector<2x9xf32> to vector<2x9xbf16>
    %c0_1 = arith.constant 0 : index
    %c0_2 = arith.constant 0 : index
    %2 = vector.load %arg2[%c0_1, %c0_2] : memref<9x256xbf16, #tpu.memory_space<vmem>>, vector<9x256xbf16>
    %cst = arith.constant dense<0.000000e+00> : vector<2x256xf32>
    %3 = tpu.matmul %1, %2, %cst {dimension_numbers = #tpu.dot_dimension_numbers<[1], [0], [0], [1], [0, 0, 1, 1], [], []>} : vector<2x9xbf16>, vector<9x256xbf16>, vector<2x256xf32> -> vector<2x256xf32>
    %c0_3 = arith.constant 0 : index
    %c0_4 = arith.constant 0 : index
    %4 = vector.load %arg3[%c0_3, %c0_4] : memref<1x256xf32, #tpu.memory_space<vmem>>, vector<1x256xf32>
    %5 = vector.broadcast %4 : vector<1x256xf32> to vector<2x256xf32>
    %6 = arith.addf %3, %5 : vector<2x256xf32>
    %cst_5 = arith.constant 0.000000e+00 : f32
    %7 = vector.broadcast %cst_5 : f32 to vector<2x256xf32>
    %8 = arith.maximumf %6, %7 : vector<2x256xf32>
    %9 = arith.truncf %8 : vector<2x256xf32> to vector<2x256xbf16>
    %c0_6 = arith.constant 0 : index
    %c0_7 = arith.constant 0 : index
    %10 = vector.load %arg4[%c0_6, %c0_7] : memref<256x256xbf16, #tpu.memory_space<vmem>>, vector<256x256xbf16>
    %cst_8 = arith.constant dense<0.000000e+00> : vector<2x256xf32>
    %11 = tpu.matmul %9, %10, %cst_8 {dimension_numbers = #tpu.dot_dimension_numbers<[1], [0], [0], [1], [0, 0, 1, 1], [], []>} : vector<2x256xbf16>, vector<256x256xbf16>, vector<2x256xf32> -> vector<2x256xf32>
    %c0_9 = arith.constant 0 : index
    %c0_10 = arith.constant 0 : index
    %12 = vector.load %arg5[%c0_9, %c0_10] : memref<1x256xf32, #tpu.memory_space<vmem>>, vector<1x256xf32>
    %13 = vector.broadcast %12 : vector<1x256xf32> to vector<2x256xf32>
    %14 = arith.addf %11, %13 : vector<2x256xf32>
    %cst_11 = arith.constant 0.000000e+00 : f32
    %15 = vector.broadcast %cst_11 : f32 to vector<2x256xf32>
    %16 = arith.maximumf %14, %15 : vector<2x256xf32>
    %17 = arith.truncf %16 : vector<2x256xf32> to vector<2x256xbf16>
    %c0_12 = arith.constant 0 : index
    %c0_13 = arith.constant 0 : index
    %18 = vector.load %arg6[%c0_12, %c0_13] : memref<256x256xbf16, #tpu.memory_space<vmem>>, vector<256x256xbf16>
    %cst_14 = arith.constant dense<0.000000e+00> : vector<2x256xf32>
    %19 = tpu.matmul %17, %18, %cst_14 {dimension_numbers = #tpu.dot_dimension_numbers<[1], [0], [0], [1], [0, 0, 1, 1], [], []>} : vector<2x256xbf16>, vector<256x256xbf16>, vector<2x256xf32> -> vector<2x256xf32>
    %c0_15 = arith.constant 0 : index
    %c0_16 = arith.constant 0 : index
    %20 = vector.load %arg7[%c0_15, %c0_16] : memref<1x256xf32, #tpu.memory_space<vmem>>, vector<1x256xf32>
    %21 = vector.broadcast %20 : vector<1x256xf32> to vector<2x256xf32>
    %22 = arith.addf %19, %21 : vector<2x256xf32>
    %cst_17 = arith.constant 0.000000e+00 : f32
    %23 = vector.broadcast %cst_17 : f32 to vector<2x256xf32>
    %24 = arith.maximumf %22, %23 : vector<2x256xf32>
    %25 = arith.truncf %24 : vector<2x256xf32> to vector<2x256xbf16>
    %c0_18 = arith.constant 0 : index
    %c0_19 = arith.constant 0 : index
    %26 = vector.load %arg8[%c0_18, %c0_19] : memref<256x128xbf16, #tpu.memory_space<vmem>>, vector<256x128xbf16>
    %cst_20 = arith.constant dense<0.000000e+00> : vector<2x128xf32>
    %27 = tpu.matmul %25, %26, %cst_20 {dimension_numbers = #tpu.dot_dimension_numbers<[1], [0], [0], [1], [0, 0, 1, 1], [], []>} : vector<2x256xbf16>, vector<256x128xbf16>, vector<2x128xf32> -> vector<2x128xf32>
    %c0_21 = arith.constant 0 : index
    %c0_22 = arith.constant 0 : index
    %28 = vector.load %arg9[%c0_21, %c0_22] : memref<1x128xf32, #tpu.memory_space<vmem>>, vector<1x128xf32>
    %29 = vector.broadcast %28 : vector<1x128xf32> to vector<2x128xf32>
    %30 = arith.addf %27, %29 : vector<2x128xf32>
    %31 = math.tanh %30 : vector<2x128xf32>
    %cst_23 = arith.constant 1.000000e+00 : f32
    %32 = vector.broadcast %cst_23 : f32 to vector<2x128xf32>
    %33 = arith.mulf %32, %31 : vector<2x128xf32>
    %c0_24 = arith.constant 0 : index
    %c0_25 = arith.constant 0 : index
    %34 = vector.load %arg10[%c0_24, %c0_25] : memref<2x128xf32, #tpu.memory_space<vmem>>, vector<2x128xf32>
    tpu.vector_store %arg10[%c0_24, %c0_25], %33 {strides = array<i32>} : memref<2x128xf32, #tpu.memory_space<vmem>>, vector<2x128xf32>,
    return
  }
  func.func @transform_0(%arg0: i32) -> (i32, i32) {
    %c0_i32 = arith.constant 0 : i32
    %c0_i32_0 = arith.constant 0 : i32
    return %arg0, %c0_i32 : i32, i32
  }
  func.func @transform_1(%arg0: i32) -> (i32, i32) {
    %c0_i32 = arith.constant 0 : i32
    %c0_i32_0 = arith.constant 0 : i32
    %c0_i32_1 = arith.constant 0 : i32
    return %c0_i32, %c0_i32_0 : i32, i32
  }
  func.func @transform_2(%arg0: i32) -> (i32, i32) {
    %c0_i32 = arith.constant 0 : i32
    %c0_i32_0 = arith.constant 0 : i32
    %c0_i32_1 = arith.constant 0 : i32
    return %c0_i32, %c0_i32_0 : i32, i32
  }
  func.func @transform_3(%arg0: i32) -> (i32, i32) {
    %c0_i32 = arith.constant 0 : i32
    %c0_i32_0 = arith.constant 0 : i32
    %c0_i32_1 = arith.constant 0 : i32
    return %c0_i32, %c0_i32_0 : i32, i32
  }
  func.func @transform_4(%arg0: i32) -> (i32, i32) {
    %c0_i32 = arith.constant 0 : i32
    %c0_i32_0 = arith.constant 0 : i32
    %c0_i32_1 = arith.constant 0 : i32
    return %c0_i32, %c0_i32_0 : i32, i32
  }
  func.func @transform_5(%arg0: i32) -> (i32, i32) {
    %c0_i32 = arith.constant 0 : i32
    %c0_i32_0 = arith.constant 0 : i32
    %c0_i32_1 = arith.constant 0 : i32
    return %c0_i32, %c0_i32_0 : i32, i32
  }
  func.func @transform_6(%arg0: i32) -> (i32, i32) {
    %c0_i32 = arith.constant 0 : i32
    %c0_i32_0 = arith.constant 0 : i32
    %c0_i32_1 = arith.constant 0 : i32
    return %c0_i32, %c0_i32_0 : i32, i32
  }
  func.func @transform_7(%arg0: i32) -> (i32, i32) {
    %c0_i32 = arith.constant 0 : i32
    %c0_i32_0 = arith.constant 0 : i32
    %c0_i32_1 = arith.constant 0 : i32
    return %c0_i32, %c0_i32_0 : i32, i32
  }
  func.func @transform_8(%arg0: i32) -> (i32, i32) {
    %c0_i32 = arith.constant 0 : i32
    %c0_i32_0 = arith.constant 0 : i32
    %c0_i32_1 = arith.constant 0 : i32
    return %c0_i32, %c0_i32_0 : i32, i32
  }
  func.func @transform_9(%arg0: i32) -> (i32, i32) {
    %c0_i32 = arith.constant 0 : i32
    %c0_i32_0 = arith.constant 0 : i32
    return %arg0, %c0_i32 : i32, i32
  }
}

</mosaic_0001>

<bundles_post_ra>
// kernel: tpu_custom_call.1
= control target key start
LH: loop header
LB: loop body
LE: loop exit
PB: predicated region body
PF: predicated region fallthrough
CT: control target
= control target key end

     0   :  { %14 = vsyncpa [#allocation3], 0  ;;  %s1415_s0 = inlined_call_operand.hbm [shape: f32[2,9], index: 0, kind: input, shape index: {}]   ;;  %s1416_s1 = inlined_call_operand.hbm [shape: bf16[9,256], index: 1, kind: input, shape index: {}]   ;;  %s1417_s2 = inlined_call_operand.vmem [shape: f32[1,256], index: 2, kind: input, shape index: {}]   ;;  %s1418_s3 = inlined_call_operand.hbm [shape: bf16[256,256], index: 3, kind: input, shape index: {}]   ;;  %s1419_s4 = inlined_call_operand.vmem [shape: f32[1,256], index: 4, kind: input, shape index: {}]   ;;  %s1420_s5 = inlined_call_operand.hbm [shape: bf16[256,256], index: 5, kind: input, shape index: {}]   ;;  %s1421_s6 = inlined_call_operand.vmem [shape: f32[1,256], index: 6, kind: input, shape index: {}]   ;;  %s1422_s7 = inlined_call_operand.hbm [shape: bf16[256,128], index: 7, kind: input, shape index: {}]   ;;  %s1423_s8 = inlined_call_operand.vmem [shape: f32[1,128], index: 8, kind: input, shape index: {}]   ;;  %s1424_s9 = inlined_call_operand.hbm [shape: f32[2,128], index: 9, kind: output, shape index: {}]  }
   0x1   :  { %15 = vsyncpa [#allocation6], 0 }
   0x2   :  { %16 = vsyncpa [#allocation9], 0 }
   0x3   :  { %17 = vsyncpa [#allocation4], 0  ;;  %s1250_s30 = smov [#allocation5]   ;;  %s1110_s13 = scalar_lea.hbm %s1416_s1, 256 }
   0x4   :  { %s33_s10 = sshll.u32 %s1250_s30, 4  ;;  %p1111_p0 = scmp.ne.s32.totalorder %s1416_s1, %s1110_s13  ;;  %s34_s10 = int_to_ptr.vmem [resolvable:$true] %s33_s10 }
   0x5   :  { %p1114_p1 = scmp.lt.u32.totalorder %s1110_s13, %s1416_s1 }
   0x7   :  { %p1116_p2 = pnand %p1114_p1, %p1111_p0 }
   0x9   :  { %1119 = shalt.err (!%p1116_p2)
}
   0xa   :  { %s1120_s18 = scalar_lea.vmem %s34_s10, 256  ;;  %p1125_p4 = scmp.lt.s32.totalorder %s34_s10, %s34_s10 }
   0xb   :  { %p1121_p3 = scmp.ne.s32.totalorder %s34_s10, %s1120_s18  ;;  %p1126_p5 = scmp.lt.s32.totalorder %s1120_s18, %s1120_s18 }
   0xd   :  { %p1127_p6 = por %p1126_p5, %p1125_p4 }
   0xf   :  { %p1128_p7 = pnand %p1127_p6, %p1121_p3 }
  0x11   :  { %1131 = shalt.err (!%p1128_p7)
}
  0x12   :  { %s1251_s19 = smov 128   ;;  %s1252_s20 = smov 8  }
  0x13   :  { %39 = dma.hbm_to_vmem [thread:$0]  %s1416_s1, 256, %s34_s10, [#allocation6], %s1251_s19, %s1251_s19, %s1252_s20  }
  0x14   :  { %s1253_s23 = smov [#allocation8]   ;;  %s1254_s25 = smov [#allocation2]  }
  0x15   :  { %s61_s24 = sshll.u32 %s1253_s23, 4  ;;  %s24_s26 = sshll.u32 %s1254_s25, 4  ;;  %s62_s24 = int_to_ptr.vmem [resolvable:$true] %s61_s24  ;;  %s25_s26 = int_to_ptr.vmem [resolvable:$true] %s24_s26 }
  0x16   :  { %s1132_s29 = scalar_lea.hbm %s1420_s5, 4096 }
  0x17   :  { %p1133_p8 = scmp.ne.s32.totalorder %s1420_s5, %s1132_s29  ;;  %p1136_p9 = scmp.lt.u32.totalorder %s1132_s29, %s1420_s5 }
  0x19   :  { %p1138_p10 = pnand %p1136_p9, %p1133_p8 }
  0x1b   :  { %1141 = shalt.err (!%p1138_p10)
}
  0x1c   :  { %s1142_s1 = scalar_lea.vmem %s62_s24, 4096  ;;  %p1147_p12 = scmp.lt.s32.totalorder %s62_s24, %s62_s24 }
  0x1d   :  { %p1143_p11 = scmp.ne.s32.totalorder %s62_s24, %s1142_s1  ;;  %p1148_p13 = scmp.lt.s32.totalorder %s1142_s1, %s1142_s1 }
  0x1f   :  { %p1149_p0 = por %p1148_p13, %p1147_p12 }
  0x21   :  { %p1150_p1 = pnand %p1149_p0, %p1143_p11 }
  0x23   :  { %1153 = shalt.err (!%p1150_p1)
}
  0x24   :  { %67 = dma.hbm_to_vmem [thread:$0]  %s1420_s5, 4096, %s62_s24, [#allocation9], %s1251_s19, %s1251_s19, %s1252_s20  }
  0x25   :  { %s1154_s17 = scalar_lea.hbm %s1415_s0, 32 }
  0x26   :  { %p1155_p2 = scmp.ne.s32.totalorder %s1415_s0, %s1154_s17  ;;  %p1158_p3 = scmp.lt.u32.totalorder %s1154_s17, %s1415_s0 }
  0x28   :  { %p1160_p4 = pnand %p1158_p3, %p1155_p2 }
  0x2a   :  { %1163 = shalt.err (!%p1160_p4)
}
  0x2b   :  { %s1164_s25 = scalar_lea.vmem %s25_s26, 32  ;;  %p1169_p6 = scmp.lt.s32.totalorder %s25_s26, %s25_s26 }
  0x2c   :  { %p1165_p5 = scmp.ne.s32.totalorder %s25_s26, %s1164_s25  ;;  %p1170_p7 = scmp.lt.s32.totalorder %s1164_s25, %s1164_s25 }
  0x2e   :  { %p1171_p8 = por %p1170_p7, %p1169_p6 }
  0x30   :  { %p1172_p9 = pnand %p1171_p8, %p1165_p5 }
  0x32   :  { %1175 = shalt.err (!%p1172_p9)
}
  0x33   :  { %27 = dma.hbm_to_vmem [thread:$0]  %s1415_s0, 32, %s25_s26, [#allocation3]  }
  0x34   :  { %s1255_s27 = smov [#allocation7]   ;;  %s1256_s29 = smov [#allocation10]  }
  0x35   :  { %s47_s28 = sshll.u32 %s1255_s27, 4  ;;  %s75_s30 = sshll.u32 %s1256_s29, 4  ;;  %s48_s28 = int_to_ptr.vmem [resolvable:$true] %s47_s28  ;;  %s76_s30 = int_to_ptr.vmem [resolvable:$true] %s75_s30 }
  0x36   :  { %s1176_s13 = scalar_lea.hbm %s1418_s3, 4096 }
  0x37   :  { %p1177_p10 = scmp.ne.s32.totalorder %s1418_s3, %s1176_s13  ;;  %p1180_p11 = scmp.lt.u32.totalorder %s1176_s13, %s1418_s3 }
  0x39   :  { %p1182_p12 = pnand %p1180_p11, %p1177_p10 }
  0x3b   :  { %1185 = shalt.err (!%p1182_p12)
}
  0x3c   :  { %s1186_s0 = scalar_lea.vmem %s48_s28, 4096  ;;  %p1191_p0 = scmp.lt.s32.totalorder %s48_s28, %s48_s28 }
  0x3d   :  { %p1187_p13 = scmp.ne.s32.totalorder %s48_s28, %s1186_s0  ;;  %p1192_p1 = scmp.lt.s32.totalorder %s1186_s0, %s1186_s0 }
  0x3f   :  { %p1193_p2 = por %p1192_p1, %p1191_p0 }
  0x41   :  { %p1194_p3 = pnand %p1193_p2, %p1187_p13 }
  0x43   :  { %1197 = shalt.err (!%p1194_p3)
}
  0x44   :  { %53 = dma.hbm_to_vmem [thread:$0]  %s1418_s3, 4096, %s48_s28, [#allocation6], %s1251_s19, %s1251_s19, %s1252_s20  }
  0x45   :  { %s1198_s21 = scalar_lea.hbm %s1422_s7, 2048 }
  0x46   :  { %p1199_p4 = scmp.ne.s32.totalorder %s1422_s7, %s1198_s21  ;;  %p1202_p5 = scmp.lt.u32.totalorder %s1198_s21, %s1422_s7 }
  0x48   :  { %p1204_p6 = pnand %p1202_p5, %p1199_p4 }
  0x4a   :  { %1207 = shalt.err (!%p1204_p6)
}
  0x4b   :  { %s1208_s24 = scalar_lea.vmem %s76_s30, 2048  ;;  %p1213_p8 = scmp.lt.s32.totalorder %s76_s30, %s76_s30 }
  0x4c   :  { %p1209_p7 = scmp.ne.s32.totalorder %s76_s30, %s1208_s24  ;;  %p1214_p9 = scmp.lt.s32.totalorder %s1208_s24, %s1208_s24 }
  0x4e   :  { %p1215_p10 = por %p1214_p9, %p1213_p8 }
  0x50   :  { %p1216_p11 = pnand %p1215_p10, %p1209_p7 }
  0x52   :  { %1219 = shalt.err (!%p1216_p11)
}
  0x53   :  { %s1257_s3 = smov 64   ;;  %s1258_s19 = smov 4  }
  0x54   :  { %81 = dma.hbm_to_vmem [thread:$0]  %s1422_s7, 2048, %s76_s30, [#allocation9], %s1257_s3, %s1257_s3, %s1258_s19  }
  0x55   :  { %1242 = dma.done.wait [#allocation3], 32  }
  0x56   :  { %1243 = vsyncadd [#allocation3], 4294967264 }
  0x57   :  { %1244 = dma.done.wait [#allocation6], 4352  }
  0x58   :  { %1245 = vsyncadd [#allocation6], 4294962944 }
  0x59   :  { %1246 = dma.done.wait [#allocation9], 6144  }
  0x5a   :  { %1247 = vsyncadd [#allocation9], 4294961152  ;;  %vm128_vm0 = vcmask 1043456   ;;  %v1259_v0 = vmov 0   ;;  %vm129_vm1 = vcmask 1044480   ;;  %v1260_v1 = vmov 65535  }
  0x5b   :  { %170 = vmatprep.mubr.bf16.mxu0 %v1259_v0  ;;  %v130_v2 = vsel %vm128_vm0, 4294967295, %v1260_v1  ;;  %v993_v4 = vld [vmem:[#allocation5 + $0x4] ss:$8 sps:$4 sm:$0x1f]   ;;  %v100_v6 = vld [vmem:[#allocation2] sm:$0x3] }
  0x5c   :  { %v131_v3 = vsel %vm129_vm1, %v130_v2, 0  ;;  %v995_v5 = vld [vmem:[#allocation5] ss:$8 sps:$4 sm:$0x1f]   ;;  %v996_v8 = vld [vmem:[#allocation7 + $0x4] ss:$8 sps:$4 sm:$0xff]   ;;  %v101_v12 = vpack.c.bf16 %v100_v6, %v100_v6  ;;  %v106_v6 = vlaneseq }
  0x5d   :  { %v136_v7 = vand.u32 %v993_v4, %v131_v3  ;;  %v998_v9 = vld [vmem:[#allocation7] ss:$8 sps:$4 sm:$0xff]   ;;  %v133_v10 = vand.u32 %v995_v5, %v131_v3  ;;  %v999_v11 = vld [vmem:[#allocation7 + $0x14] ss:$8 sps:$4 sm:$0xff]   ;;  %387 = vmatprep.subr.bf16.mxu1 %v996_v8  ;;  %vm124_vm2 = vcmask 72704  }
  0x5e   :  { %388 = vmatpush1.bf16.msra.mxu1 %v998_v9  ;;  %v1001_v13 = vld [vmem:[#allocation7 + $0x10] ss:$8 sps:$4 sm:$0xff]   ;;  %v1002_v14 = vld [vmem:[#allocation7 + $0x24] ss:$8 sps:$4 sm:$0xff]   ;;  %v1004_v15 = vld [vmem:[#allocation7 + $0x20] ss:$8 sps:$4 sm:$0xff]  }
  0x5f   :  { %138 = vmatprep.subr.bf16.mxu0 %v136_v7  ;;  %389 = vmatprep.subr.bf16.mxu1 %v999_v11  ;;  %v1005_v16 = vld [vmem:[#allocation7 + $0x34] ss:$8 sps:$4 sm:$0xff]   ;;  %v1007_v17 = vld [vmem:[#allocation7 + $0x30] ss:$8 sps:$4 sm:$0xff]   ;;  %v1008_v18 = vld [vmem:[#allocation7 + $0x44] ss:$8 sps:$4 sm:$0xff]  }
  0x60   :  { %139 = vmatpush1.bf16.msra.mxu0 %v133_v10  ;;  %v1010_v19 = vld [vmem:[#allocation7 + $0x40] ss:$8 sps:$4 sm:$0xff]   ;;  %v1011_v20 = vld [vmem:[#allocation7 + $0x54] ss:$8 sps:$4 sm:$0xff]   ;;  %v1013_v21 = vld [vmem:[#allocation7 + $0x50] ss:$8 sps:$4 sm:$0xff]  }
  0x61   :  { %v1014_v22 = vld [vmem:[#allocation7 + $0x64] ss:$8 sps:$4 sm:$0xff]   ;;  %v1016_v23 = vld [vmem:[#allocation7 + $0x60] ss:$8 sps:$4 sm:$0xff]   ;;  %v1017_v24 = vld [vmem:[#allocation7 + $0x74] ss:$8 sps:$4 sm:$0xff]  }
  0x62   :  { %390 = vmatpush1.bf16.msra.mxu1 %v1001_v13  ;;  %v1019_v25 = vld [vmem:[#allocation7 + $0x70] ss:$8 sps:$4 sm:$0xff]   ;;  %v1020_v26 = vld [vmem:[#allocation7 + $0x84] ss:$8 sps:$4 sm:$0xff]   ;;  %v1022_v27 = vld [vmem:[#allocation7 + $0x80] ss:$8 sps:$4 sm:$0xff]  }
  0x63   :  { %877 = vmatmul.mubr.msk.bf16.vlgmr.msra.gmra.mrb[0].mxu0 %vm124_vm2, %v101_v12  ;;  %391 = vmatprep.subr.bf16.mxu1 %v1002_v14  ;;  %v1023_v28 = vld [vmem:[#allocation7 + $0x94] ss:$8 sps:$4 sm:$0xff]   ;;  %v1025_v29 = vld [vmem:[#allocation7 + $0x90] ss:$8 sps:$4 sm:$0xff]   ;;  %v1026_v30 = vld [vmem:[#allocation7 + $0xa4] ss:$8 sps:$4 sm:$0xff]  }
  0x64   :  { %v1028_v31 = vld [vmem:[#allocation7 + $0xa0] ss:$8 sps:$4 sm:$0xff]   ;;  %v1029_v32 = vld [vmem:[#allocation7 + $0xb4] ss:$8 sps:$4 sm:$0xff]   ;;  %v1031_v33 = vld [vmem:[#allocation7 + $0xb0] ss:$8 sps:$4 sm:$0xff]  }
  0x65   :  { %v1032_v34 = vld [vmem:[#allocation7 + $0xc4] ss:$8 sps:$4 sm:$0xff]   ;;  %v1034_v35 = vld [vmem:[#allocation7 + $0xc0] ss:$8 sps:$4 sm:$0xff]   ;;  %v1035_v36 = vld [vmem:[#allocation7 + $0xd4] ss:$8 sps:$4 sm:$0xff]  }
  0x66   :  { %392 = vmatpush1.bf16.msra.mxu1 %v1004_v15  ;;  %v1037_v37 = vld [vmem:[#allocation7 + $0xd0] ss:$8 sps:$4 sm:$0xff]   ;;  %v1038_v38 = vld [vmem:[#allocation7 + $0xe4] ss:$8 sps:$4 sm:$0xff]   ;;  %v1040_v39 = vld [vmem:[#allocation7 + $0xe0] ss:$8 sps:$4 sm:$0xff]  }
  0x67   :  { %393 = vmatprep.subr.bf16.mxu1 %v1005_v16  ;;  %v1041_v40 = vld [vmem:[#allocation7 + $0xf4] ss:$8 sps:$4 sm:$0xff]   ;;  %v1043_v41 = vld [vmem:[#allocation7 + $0xf0] ss:$8 sps:$4 sm:$0xff]   ;;  %v1044_v42 = vld [vmem:[#allocation8] ss:$8 sps:$4 sm:$0xff]  }
  0x68   :  { %v1046_v43 = vld [vmem:[#allocation8 + $0x4] ss:$8 sps:$4 sm:$0xff]   ;;  %v1049_v44 = vld [vmem:[#allocation8 + $0x14] ss:$8 sps:$4 sm:$0xff]   ;;  %v1047_v45 = vld [vmem:[#allocation8 + $0x10] ss:$8 sps:$4 sm:$0xff]  }
  0x69   :  { %636 = vmatprep.subr.bf16.mxu0 %v1046_v43  ;;  %v1052_v46 = vld [vmem:[#allocation8 + $0x24] ss:$8 sps:$4 sm:$0xff]   ;;  %v1050_v47 = vld [vmem:[#allocation8 + $0x20] ss:$8 sps:$4 sm:$0xff]   ;;  %v1055_v48 = vld [vmem:[#allocation8 + $0x34] ss:$8 sps:$4 sm:$0xff]  }
  0x6a   :  { %394 = vmatpush1.bf16.msra.mxu1 %v1007_v17  ;;  %637 = vmatpush1.bf16.msra.mxu0 %v1044_v42  ;;  %v1053_v49 = vld [vmem:[#allocation8 + $0x30] ss:$8 sps:$4 sm:$0xff]   ;;  %v1058_v50 = vld [vmem:[#allocation8 + $0x44] ss:$8 sps:$4 sm:$0xff]   ;;  %v1056_v51 = vld [vmem:[#allocation8 + $0x40] ss:$8 sps:$4 sm:$0xff]  }
  0x6b   :  { %395 = vmatprep.subr.bf16.mxu1 %v1008_v18  ;;  %638 = vmatprep.subr.bf16.mxu0 %v1049_v44  ;;  %v1061_v52 = vld [vmem:[#allocation8 + $0x54] ss:$8 sps:$4 sm:$0xff]   ;;  %v1059_v53 = vld [vmem:[#allocation8 + $0x50] ss:$8 sps:$4 sm:$0xff]   ;;  %v1064_v54 = vld [vmem:[#allocation8 + $0x64] ss:$8 sps:$4 sm:$0xff]  }
  0x6c   :  { %v1062_v55 = vld [vmem:[#allocation8 + $0x60] ss:$8 sps:$4 sm:$0xff]   ;;  %v1067_v56 = vld [vmem:[#allocation8 + $0x74] ss:$8 sps:$4 sm:$0xff]   ;;  %v1065_v57 = vld [vmem:[#allocation8 + $0x70] ss:$8 sps:$4 sm:$0xff]  }
  0x6d   :  { %v1070_v58 = vld [vmem:[#allocation8 + $0x84] ss:$8 sps:$4 sm:$0xff]   ;;  %v1068_v59 = vld [vmem:[#allocation8 + $0x80] ss:$8 sps:$4 sm:$0xff]   ;;  %v1073_v60 = vld [vmem:[#allocation8 + $0x94] ss:$8 sps:$4 sm:$0xff]  }
  0x6e   :  { %396 = vmatpush1.bf16.msra.mxu1 %v1010_v19  ;;  %639 = vmatpush1.bf16.msra.mxu0 %v1047_v45  ;;  %v1071_v61 = vld [vmem:[#allocation8 + $0x90] ss:$8 sps:$4 sm:$0xff]   ;;  %v1076_v62 = vld [vmem:[#allocation8 + $0xa4] ss:$8 sps:$4 sm:$0xff]   ;;  %v1074_v63 = vld [vmem:[#allocation8 + $0xa0] ss:$8 sps:$4 sm:$0xff]  }
  0x6f   :  { %397 = vmatprep.subr.bf16.mxu1 %v1011_v20  ;;  %640 = vmatprep.subr.bf16.mxu0 %v1052_v46  ;;  %v1079_v0 = vld [vmem:[#allocation8 + $0xb4] ss:$8 sps:$4 sm:$0xff]   ;;  %v1077_v1 = vld [vmem:[#allocation8 + $0xb0] ss:$8 sps:$4 sm:$0xff]   ;;  %v1082_v2 = vld [vmem:[#allocation8 + $0xc4] ss:$8 sps:$4 sm:$0xff]  }
  0x70   :  { %v1080_v3 = vld [vmem:[#allocation8 + $0xc0] ss:$8 sps:$4 sm:$0xff]   ;;  %v1085_v4 = vld [vmem:[#allocation8 + $0xd4] ss:$8 sps:$4 sm:$0xff]   ;;  %v1083_v5 = vld [vmem:[#allocation8 + $0xd0] ss:$8 sps:$4 sm:$0xff]  }
  0x71   :  { %v107_v7 = vshrl.u32 %v106_v6, 7  ;;  %v104_v9 = vld [vmem:[%s1417_s2] sm:$0x3] }
  0x72   :  { %398 = vmatpush1.bf16.msra.mxu1 %v1013_v21  ;;  %641 = vmatpush1.bf16.msra.mxu0 %v1050_v47  ;;  %v942_v6 = vld [vmem:[%s1423_s8] ss:$0 sm:$0xff] }
  0x73   :  { %399 = vmatprep.subr.bf16.mxu1 %v1014_v22  ;;  %642 = vmatprep.subr.bf16.mxu0 %v1055_v48  ;;  %v1381_v8 = vsub.s32 0, %v107_v7  ;;  %v1386_v10 = vsub.s32 1, %v107_v7 }
  0x75   :  { %v109_v11 = vrot.slane %v104_v9, %v1381_v8  ;;  %v113_v12 = vrot.slane %v104_v9, %v1386_v10 }
  0x76   :  { %400 = vmatpush1.bf16.msra.mxu1 %v1016_v23  ;;  %643 = vmatpush1.bf16.msra.mxu0 %v1053_v49  ;;  %v1088_v23 = vld [vmem:[#allocation8 + $0xe4] ss:$8 sps:$4 sm:$0xff]  }
  0x77   :  { %401 = vmatprep.subr.bf16.mxu1 %v1017_v24  ;;  %644 = vmatprep.subr.bf16.mxu0 %v1058_v50  ;;  %v1086_v24 = vld [vmem:[#allocation8 + $0xe0] ss:$8 sps:$4 sm:$0xff]  }
  0x7a   :  { %402 = vmatpush1.bf16.msra.mxu1 %v1019_v25  ;;  %645 = vmatpush1.bf16.msra.mxu0 %v1056_v51  ;;  %v1091_v25 = vld [vmem:[#allocation8 + $0xf4] ss:$8 sps:$4 sm:$0xff]  }
  0x7b   :  { %403 = vmatprep.subr.bf16.mxu1 %v1020_v26  ;;  %646 = vmatprep.subr.bf16.mxu0 %v1061_v52  ;;  %v1089_v26 = vld [vmem:[#allocation8 + $0xf0] ss:$8 sps:$4 sm:$0xff]  }
  0x7c   :  { %v1104_v52 = vld [vmem:[#allocation10 + $0x70] sm:$0xff]  }
  0x7e   :  { %404 = vmatpush1.bf16.msra.mxu1 %v1022_v27  ;;  %647 = vmatpush1.bf16.msra.mxu0 %v1059_v53  ;;  %v1092_v27 = vld [vmem:[#allocation10 + $0x40] sm:$0xff]   ;;  %v1105_v53 = vld [vmem:[#allocation10 + $0x30] sm:$0xff]  }
  0x7f   :  { %405 = vmatprep.subr.bf16.mxu1 %v1023_v28  ;;  %648 = vmatprep.subr.bf16.mxu0 %v1064_v54  ;;  %v1093_v28 = vld [vmem:[#allocation10] sm:$0xff]   ;;  %v1106_v54 = vld [vmem:[#allocation10 + $0x78] sm:$0xff]  }
  0x82   :  { %406 = vmatpush1.bf16.msra.mxu1 %v1025_v29  ;;  %649 = vmatpush1.bf16.msra.mxu0 %v1062_v55  ;;  %v1094_v29 = vld [vmem:[#allocation10 + $0x48] sm:$0xff]   ;;  %v1107_v55 = vld [vmem:[#allocation10 + $0x38] sm:$0xff]  }
  0x83   :  { %407 = vmatprep.subr.bf16.mxu1 %v1026_v30  ;;  %650 = vmatprep.subr.bf16.mxu0 %v1067_v56  ;;  %v1095_v30 = vld [vmem:[#allocation10 + $0x8] sm:$0xff]  }
  0x84   :  { %v464_v56 = vld [vmem:[%s1421_s6] sm:$0x3]  ;;  %s1261_s6 = smov [#allocation11]  }
  0x85   :  { %s864_s13 = sshll.u32 %s1261_s6, 4  ;;  %s865_s13 = int_to_ptr.vmem [resolvable:$true] %s864_s13 }
  0x86   :  { %408 = vmatpush1.bf16.msra.mxu1 %v1028_v31  ;;  %651 = vmatpush1.bf16.msra.mxu0 %v1065_v57  ;;  %v1096_v31 = vld [vmem:[#allocation10 + $0x50] sm:$0xff]   ;;  %v469_v57 = vrot.slane %v464_v56, %v1381_v8  ;;  %s1220_s1 = scalar_lea.vmem %s865_s13, 32  ;;  %p1225_p13 = scmp.lt.s32.totalorder %s865_s13, %s865_s13 }
  0x87   :  { %409 = vmatprep.subr.bf16.mxu1 %v1029_v32  ;;  %652 = vmatprep.subr.bf16.mxu0 %v1070_v58  ;;  %v1097_v32 = vld [vmem:[#allocation10 + $0x10] sm:$0xff]   ;;  %v473_v58 = vrot.slane %v464_v56, %v1386_v10  ;;  %p1221_p12 = scmp.ne.s32.totalorder %s865_s13, %s1220_s1  ;;  %p1226_p0 = scmp.lt.s32.totalorder %s1220_s1, %s1220_s1 }
  0x89   :  { %p1227_p1 = por %p1226_p0, %p1225_p13 }
  0x8a   :  { %410 = vmatpush1.bf16.msra.mxu1 %v1031_v33  ;;  %653 = vmatpush1.bf16.msra.mxu0 %v1068_v59  ;;  %v1098_v33 = vld [vmem:[#allocation10 + $0x58] sm:$0xff]  }
  0x8b   :  { %411 = vmatprep.subr.bf16.mxu1 %v1032_v34  ;;  %654 = vmatprep.subr.bf16.mxu0 %v1073_v60  ;;  %v1099_v34 = vld [vmem:[#allocation10 + $0x18] sm:$0xff]   ;;  %p1228_p2 = pnand %p1227_p1, %p1221_p12 }
  0x8e   :  { %412 = vmatpush1.bf16.msra.mxu1 %v1034_v35  ;;  %655 = vmatpush1.bf16.msra.mxu0 %v1071_v61  ;;  %v1100_v35 = vld [vmem:[#allocation10 + $0x60] sm:$0xff]  }
  0x8f   :  { %413 = vmatprep.subr.bf16.mxu1 %v1035_v36  ;;  %656 = vmatprep.subr.bf16.mxu0 %v1076_v62  ;;  %v1101_v36 = vld [vmem:[#allocation10 + $0x20] sm:$0xff]  }
  0x92   :  { %414 = vmatpush1.bf16.msra.mxu1 %v1037_v37  ;;  %657 = vmatpush1.bf16.msra.mxu0 %v1074_v63  ;;  %v1102_v37 = vld [vmem:[#allocation10 + $0x68] sm:$0xff]  }
  0x93   :  { %415 = vmatprep.subr.bf16.mxu1 %v1038_v38  ;;  %658 = vmatprep.subr.bf16.mxu0 %v1079_v0  ;;  %v1103_v38 = vld [vmem:[#allocation10 + $0x28] sm:$0xff]  }
  0x96   :  { %416 = vmatpush1.bf16.msra.mxu1 %v1040_v39  ;;  %659 = vmatpush1.bf16.msra.mxu0 %v1077_v1  ;;  %v215_v39 = vld [vmem:[%s1419_s4] sm:$0x3] }
  0x97   :  { %417 = vmatprep.subr.bf16.mxu1 %v1041_v40  ;;  %660 = vmatprep.subr.bf16.mxu0 %v1082_v2  ;;  %v220_v40 = vrot.slane %v215_v39, %v1381_v8 }
  0x9a   :  { %418 = vmatpush1.bf16.msra.mxu1 %v1043_v41  ;;  %661 = vmatpush1.bf16.msra.mxu0 %v1080_v3  ;;  %v224_v41 = vrot.slane %v215_v39, %v1386_v10 }
  0x9b   :  { %662 = vmatprep.subr.bf16.mxu0 %v1085_v4  ;;  %959 = vmatprep.subr.bf16.mxu1 %v1092_v27 }
  0x9e   :  { %663 = vmatpush1.bf16.msra.mxu0 %v1083_v5 }
  0x9f   :  { %664 = vmatprep.subr.bf16.mxu0 %v1088_v23 }
  0xa2   :  { %665 = vmatpush1.bf16.msra.mxu0 %v1086_v24 }
  0xa3   :  { %666 = vmatprep.subr.bf16.mxu0 %v1091_v25 }
  0xa6   :  { %667 = vmatpush1.bf16.msra.mxu0 %v1089_v26 }
 0x136   :  { %v172_v13 = vpop.f32.mrb[0].mxu0 }
 0x137   :  { %v173_v14 = vadd.f32 %v172_v13, %v109_v11  ;;  %v174_v15 = vpop.f32.mrb[1].mxu0 }
 0x138   :  { %v175_v16 = vadd.f32 %v174_v15, %v113_v12  ;;  %v176_v17 = vpop.f32.mrb[2].mxu0 }
 0x139   :  { %v179_v18 = vmax.f32 %v173_v14, 0.0  ;;  %v177_v19 = vpop.f32.mrb[3].mxu0 }
 0x13a   :  { %v180_v20 = vmax.f32 %v175_v16, 0.0 }
 0x13b   :  { %v181_v22 = vpack.c.bf16 %v179_v18, %v179_v18 }
 0x13c   :  { %v182_v21 = vpack.c.bf16 %v180_v20, %v180_v20 }
 0x13e   :  { %419 = vmatprep.mubr.bf16.mxu1 %v182_v21 }
 0x13f   :  { %420 = vmatmul.mubr.bf16.vlgmr.msra.gmra.mrb[0].mxu1 %v181_v22 }
 0x140   :  { %960 = vmatpush3.bf16.msra.mxu1 %v1093_v28 }
 0x141   :  { %961 = vmatprep.subr.bf16.mxu1 %v1094_v29 }
 0x144   :  { %962 = vmatpush3.bf16.msra.mxu1 %v1095_v30 }
 0x145   :  { %963 = vmatprep.subr.bf16.mxu1 %v1096_v31 }
 0x148   :  { %964 = vmatpush3.bf16.msra.mxu1 %v1097_v32 }
 0x149   :  { %965 = vmatprep.subr.bf16.mxu1 %v1098_v33 }
 0x14c   :  { %966 = vmatpush3.bf16.msra.mxu1 %v1099_v34 }
 0x14d   :  { %967 = vmatprep.subr.bf16.mxu1 %v1100_v35 }
 0x150   :  { %968 = vmatpush3.bf16.msra.mxu1 %v1101_v36 }
 0x151   :  { %969 = vmatprep.subr.bf16.mxu1 %v1102_v37 }
 0x154   :  { %970 = vmatpush3.bf16.msra.mxu1 %v1103_v38 }
 0x155   :  { %971 = vmatprep.subr.bf16.mxu1 %v1104_v52 }
 0x158   :  { %972 = vmatpush3.bf16.msra.mxu1 %v1105_v53 }
 0x159   :  { %973 = vmatprep.subr.bf16.mxu1 %v1106_v54 }
 0x15c   :  { %974 = vmatpush3.bf16.msra.mxu1 %v1107_v55 }
 0x212   :  { %v421_v42 = vpop.f32.mrb[0].mxu1 }
 0x213   :  { %v422_v43 = vadd.f32 %v421_v42, %v220_v40  ;;  %v423_v44 = vpop.f32.mrb[1].mxu1 }
 0x214   :  { %v424_v45 = vadd.f32 %v423_v44, %v224_v41  ;;  %v425_v46 = vpop.f32.mrb[2].mxu1 }
 0x215   :  { %v428_v47 = vmax.f32 %v422_v43, 0.0  ;;  %v426_v48 = vpop.f32.mrb[3].mxu1 }
 0x216   :  { %v429_v49 = vmax.f32 %v424_v45, 0.0 }
 0x217   :  { %v430_v51 = vpack.c.bf16 %v428_v47, %v428_v47 }
 0x218   :  { %v431_v50 = vpack.c.bf16 %v429_v49, %v429_v49 }
 0x21a   :  { %668 = vmatprep.mubr.bf16.mxu0 %v431_v50 }
 0x21b   :  { %669 = vmatmul.mubr.bf16.vlgmr.msra.gmra.mrb[4].mxu0 %v430_v51 }
 0x2ee   :  { %v670_v59 = vpop.f32.mrb[4].mxu0 }
 0x2ef   :  { %v671_v60 = vadd.f32 %v670_v59, %v469_v57  ;;  %v672_v61 = vpop.f32.mrb[5].mxu0 }
 0x2f0   :  { %v673_v62 = vadd.f32 %v672_v61, %v473_v58  ;;  %v674_v63 = vpop.f32.mrb[6].mxu0 }
 0x2f1   :  { %v677_v0 = vmax.f32 %v671_v60, 0.0  ;;  %v675_v1 = vpop.f32.mrb[7].mxu0 }
 0x2f2   :  { %v678_v2 = vmax.f32 %v673_v62, 0.0 }
 0x2f3   :  { %v679_v4 = vpack.c.bf16 %v677_v0, %v677_v0 }
 0x2f4   :  { %v680_v3 = vpack.c.bf16 %v678_v2, %v678_v2 }
 0x2f6   :  { %848 = vmatprep.mubr.bf16.mxu1 %v680_v3 }
 0x2f7   :  { %849 = vmatmul.mubr.bf16.vlgmr.msra.gmra.mrb[4].mxu1 %v679_v4 }
 0x3ca   :  { %v975_v5 = vpop.f32.mrb[4].mxu1 }
 0x3cb   :  { %v976_v7 = vpop.f32.mrb[5].mxu1 }
 0x3cc   :  { %v977_v8 = vadd.f32 %v976_v7, %v975_v5  ;;  %v978_v9 = vpop.f32.mrb[6].mxu1 }
 0x3cd   :  { %v979_v10 = vpop.f32.mrb[7].mxu1 }
 0x3ce   :  { %v851_v11 = vadd.f32 %v977_v8, %v942_v6 }
 0x3d0   :  { %1108 = vtanh.f32 %v851_v11 }
 0x3da   :  { %v1109_v12 = vpop.eup %1108 }
 0x3db   :  { %857 = vst [vmem:[#allocation11] sm:$0x3] %v1109_v12 }
 0x3dc   :  { %1231 = shalt.err (!%p1228_p2)
}
 0x3dd   :  { %s1232_s14 = scalar_lea.hbm %s1424_s9, 32 }
 0x3de   :  { %p1233_p3 = scmp.ne.s32.totalorder %s1424_s9, %s1232_s14  ;;  %p1236_p4 = scmp.lt.u32.totalorder %s1232_s14, %s1424_s9 }
 0x3e0   :  { %p1238_p5 = pnand %p1236_p4, %p1233_p3 }
 0x3e2   :  { %1241 = shalt.err (!%p1238_p5)
}
 0x3e3   :  { %867 = dma.vmem_to_hbm [thread:$0]  %s865_s13, 32, %s1424_s9, [#allocation4]  }
 0x3e4   :  { %1248 = dma.done.wait [#allocation4], 32  }
 0x3e5   :  { %1249 = vsyncadd [#allocation4], 4294967264 }
 0x3e6   :  { %871 = vsyncpa [#allocation3], 1 }
 0x3e7   :  { %872 = vsyncpa [#allocation6], 1 }
 0x3e8   :  { %873 = vsyncpa [#allocation9], 1 }
 0x3e9   :  { %874 = vsyncpa [#allocation4], 1 }

</bundles_post_ra>
